<compile_context>
chip_gen: v7x
topology: tpu7x:2x2x1
jax: 0.10.0
libtpu: 0.0.40
codegen_flags: <defaults>
</compile_context>

<pallas_src>
import functools

import jax
import jax.numpy as jnp
from jax.experimental import pallas as pl
from jax.experimental.pallas import tpu as pltpu

_LANE = 128     # TPU lane width: every feature dim is padded to a multiple of this
_SUBLANE = 8    # f32 sublane: batch tiles are multiples of this


def _round_up(n, m):
    return ((n + m - 1) // m) * m


def _actor_kernel(x_ref,
                  w1, b1, w2, b2, w3, b3, w4, b4,
                  w5, b5, w6, b6, w7, b7, w8, b8,
                  out_ref, *, action_dim):
    """One TILE_B batch tile of the 8-layer MLP + masked softmax.

    Elementwise math stays f32; matmul operands are bf16 (input tile arrives
    bf16, activations are cast right before each jnp.dot) with f32 MXU
    accumulation.
    """
    h = x_ref[...]                                            # [TILE_B, IN_PAD] bf16

    # fc1 .. fc7 : Linear -> ReLU   (unrolled Python loop -> full LLO visibility)
    for w_ref, b_ref in ((w1, b1), (w2, b2), (w3, b3), (w4, b4),
                         (w5, b5), (w6, b6), (w7, b7)):
        h = jnp.dot(h.astype(jnp.bfloat16), w_ref[...],
                    preferred_element_type=jnp.float32)
        h = jnp.maximum(h + b_ref[...], 0.0)                  # bias broadcast once/layer

    # fc8 : Linear -> softmax over the real action lanes only
    logits = jnp.dot(h.astype(jnp.bfloat16), w8[...],
                     preferred_element_type=jnp.float32) + b8[...]

    lane = jax.lax.broadcasted_iota(jnp.int32, logits.shape, dimension=1)
    logits = jnp.where(lane < action_dim, logits, jnp.float32(-1e30))

    m = jnp.max(logits, axis=-1, keepdims=True)
    e = jnp.exp(logits - m)
    denom = jnp.sum(e, axis=-1, keepdims=True)
    # approx=True -> EUP vrcp slot; error ~1e-4, fine for action probabilities.
    out_ref[...] = (e * pl.reciprocal(denom, approx=True)).astype(out_ref.dtype)


def actor_network_forward(x, padded_params, action_dim, *, tile_b=256):
    """x: [B, input_dim] f32; padded_params: lane-padded (w: bf16 [in,out], b: f32 [1,out])."""
    batch, in_dim = x.shape
    in_pad = padded_params[0].shape[0]
    act_pad = padded_params[-1].shape[-1]

    # Batch tile: multiple of 8 sublanes, capped at tile_b, then pad B up to a tile multiple.
    tile_b = min(tile_b, _round_up(batch, _SUBLANE))
    b_pad = _round_up(batch, tile_b)

    # Zero-pad input rows (extra batch) and columns (extra features) and cast to
    # bf16 in the same copy (halves the streamed x DMA bytes). Padded feature
    # columns meet zero weight rows so results are unchanged; the kernel would
    # cast to bf16 before the first matmul anyway, so precision is identical.
    x_p = (jnp.zeros((b_pad, in_pad), jnp.bfloat16)
           .at[:batch, :in_dim].set(x.astype(jnp.bfloat16)))

    grid = (b_pad // tile_b,)

    # Weights/biases: full block, constant index map -> stay resident in VMEM
    # across every batch step (no re-DMA).
    param_specs = [pl.BlockSpec(p.shape, lambda i: (0, 0)) for p in padded_params]

    out_padded = pl.pallas_call(
        functools.partial(_actor_kernel, action_dim=action_dim),
        out_shape=jax.ShapeDtypeStruct((b_pad, act_pad), jnp.float32),
        grid=grid,
        in_specs=[pl.BlockSpec((tile_b, in_pad), lambda i: (i, 0))] + param_specs,
        out_specs=pl.BlockSpec((tile_b, act_pad), lambda i: (i, 0)),
        compiler_params=pltpu.CompilerParams(
            # v7x: shard the batch grid across both TensorCores; harmless on v5e/v6e.
            dimension_semantics=("parallel",),
            # Explicit budget so the weights-resident strategy is checked against
            # v7x's 64 MiB physical VMEM too (48 MiB is safe on every generation).
            vmem_limit_bytes=48 * 1024 * 1024,
        ),
    )(x_p, *padded_params)

    # Lane-dense kernel output; slice the real batch rows / action lanes here.
    return out_padded[:batch, :action_dim]


def init_actor_params(key, input_dim, hidden_dim, action_dim):
    """PyTorch nn.Linear default init: U(-1/sqrt(fan_in), 1/sqrt(fan_in)).
    Returns unpadded f32 params stored as w: [in, out], b: [1, out]."""
    dims = [input_dim] + [hidden_dim] * 7 + [action_dim]
    params = []
    for i in range(8):
        fan_in, fan_out = dims[i], dims[i + 1]
        key, kw, kb = jax.random.split(key, 3)
        bound = 1.0 / float(fan_in) ** 0.5
        w = jax.random.uniform(kw, (fan_in, fan_out), jnp.float32,
                               minval=-bound, maxval=bound)
        b = jax.random.uniform(kb, (1, fan_out), jnp.float32,
                               minval=-bound, maxval=bound)
        params.extend([w, b])
    return tuple(params)


def pad_params_for_kernel(params):
    """Zero-pad every feature dim to the 128-lane width; weights -> bf16,
    biases stay f32. Zero pad keeps padded hidden channels exactly 0 through ReLU."""
    padded = []
    for i in range(0, len(params), 2):
        w, b = params[i], params[i + 1]
        in_p = _round_up(w.shape[0], _LANE)
        out_p = _round_up(w.shape[1], _LANE)
        w_p = (jnp.zeros((in_p, out_p), jnp.bfloat16)
               .at[:w.shape[0], :w.shape[1]].set(w.astype(jnp.bfloat16)))
        b_p = jnp.zeros((1, out_p), jnp.float32).at[:, :b.shape[1]].set(b)
        padded.extend([w_p, b_p])
    return tuple(padded)


def _reference_forward(x, params):
    """Pure-JAX reference with the same bf16-matmul / f32-accumulate recipe."""
    h = x
    for i in range(7):
        w, b = params[2 * i], params[2 * i + 1]
        h = jnp.maximum(
            jnp.dot(h.astype(jnp.bfloat16), w.astype(jnp.bfloat16),
                    preferred_element_type=jnp.float32) + b, 0.0)
    logits = jnp.dot(h.astype(jnp.bfloat16), params[14].astype(jnp.bfloat16),
                     preferred_element_type=jnp.float32) + params[15]
    return jax.nn.softmax(logits, axis=-1)


if __name__ == "__main__":
    # NOTE: at these toy sizes the call is launch-overhead dominated; in real
    # use stack many env/timestep forwards into one large batch per call.
    batch = 2
    input_dim = 16
    hidden_dim = 32
    action_dim = 8

    key = jax.random.PRNGKey(0)
    key, kx = jax.random.split(key)
    x = jax.random.normal(kx, (batch, input_dim), jnp.float32)

    raw_params = init_actor_params(key, input_dim, hidden_dim, action_dim)
    padded_params = pad_params_for_kernel(raw_params)

    out = actor_network_forward(x, padded_params, action_dim)
    out = jax.block_until_ready(out)

    ref = _reference_forward(x, raw_params)
    assert out.shape == (batch, action_dim)
    # approx reciprocal + bf16 matmuls -> tolerances a bit looser than pure f32.
    assert jnp.allclose(jnp.sum(out, axis=-1), 1.0, atol=5e-3)
    assert jnp.allclose(out, ref, atol=5e-3, rtol=5e-2)

    print("KERNEL_OK")
</pallas_src>

<mosaic_0001>
module attributes {stable_mosaic.version = 11 : i64} {
  func.func @_actor_kernel(%arg0: i32, %arg1: memref<8x128xbf16, #tpu.memory_space<vmem>>, %arg2: memref<128x128xbf16, #tpu.memory_space<vmem>>, %arg3: memref<1x128xf32, #tpu.memory_space<vmem>>, %arg4: memref<128x128xbf16, #tpu.memory_space<vmem>>, %arg5: memref<1x128xf32, #tpu.memory_space<vmem>>, %arg6: memref<128x128xbf16, #tpu.memory_space<vmem>>, %arg7: memref<1x128xf32, #tpu.memory_space<vmem>>, %arg8: memref<128x128xbf16, #tpu.memory_space<vmem>>, %arg9: memref<1x128xf32, #tpu.memory_space<vmem>>, %arg10: memref<128x128xbf16, #tpu.memory_space<vmem>>, %arg11: memref<1x128xf32, #tpu.memory_space<vmem>>, %arg12: memref<128x128xbf16, #tpu.memory_space<vmem>>, %arg13: memref<1x128xf32, #tpu.memory_space<vmem>>, %arg14: memref<128x128xbf16, #tpu.memory_space<vmem>>, %arg15: memref<1x128xf32, #tpu.memory_space<vmem>>, %arg16: memref<128x128xbf16, #tpu.memory_space<vmem>>, %arg17: memref<1x128xf32, #tpu.memory_space<vmem>>, %arg18: memref<8x128xf32, #tpu.memory_space<vmem>>) attributes {dimension_semantics = [#tpu.dimension_semantics<parallel>], iteration_bounds = array<i64: 1>, scalar_prefetch = 0 : i64, scratch_operands = 0 : i64, tpu.core_type = #tpu.core_type<tc>, window_params = [{transform_indices = @transform_0, window_bounds = array<i64: 8, 128>}, {pipeline_mode = #tpu.pipeline_mode<synchronous>, transform_indices = @transform_1, window_bounds = array<i64: 128, 128>}, {pipeline_mode = #tpu.pipeline_mode<synchronous>, transform_indices = @transform_2, window_bounds = array<i64: 1, 128>}, {pipeline_mode = #tpu.pipeline_mode<synchronous>, transform_indices = @transform_3, window_bounds = array<i64: 128, 128>}, {pipeline_mode = #tpu.pipeline_mode<synchronous>, transform_indices = @transform_4, window_bounds = array<i64: 1, 128>}, {pipeline_mode = #tpu.pipeline_mode<synchronous>, transform_indices = @transform_5, window_bounds = array<i64: 128, 128>}, {pipeline_mode = #tpu.pipeline_mode<synchronous>, transform_indices = @transform_6, window_bounds = array<i64: 1, 128>}, {pipeline_mode = #tpu.pipeline_mode<synchronous>, transform_indices = @transform_7, window_bounds = array<i64: 128, 128>}, {pipeline_mode = #tpu.pipeline_mode<synchronous>, transform_indices = @transform_8, window_bounds = array<i64: 1, 128>}, {pipeline_mode = #tpu.pipeline_mode<synchronous>, transform_indices = @transform_9, window_bounds = array<i64: 128, 128>}, {pipeline_mode = #tpu.pipeline_mode<synchronous>, transform_indices = @transform_10, window_bounds = array<i64: 1, 128>}, {pipeline_mode = #tpu.pipeline_mode<synchronous>, transform_indices = @transform_11, window_bounds = array<i64: 128, 128>}, {pipeline_mode = #tpu.pipeline_mode<synchronous>, transform_indices = @transform_12, window_bounds = array<i64: 1, 128>}, {pipeline_mode = #tpu.pipeline_mode<synchronous>, transform_indices = @transform_13, window_bounds = array<i64: 128, 128>}, {pipeline_mode = #tpu.pipeline_mode<synchronous>, transform_indices = @transform_14, window_bounds = array<i64: 1, 128>}, {pipeline_mode = #tpu.pipeline_mode<synchronous>, transform_indices = @transform_15, window_bounds = array<i64: 128, 128>}, {pipeline_mode = #tpu.pipeline_mode<synchronous>, transform_indices = @transform_16, window_bounds = array<i64: 1, 128>}, {transform_indices = @transform_17, window_bounds = array<i64: 8, 128>}]} {
    %c0 = arith.constant 0 : index
    %c0_0 = arith.constant 0 : index
    %0 = vector.load %arg1[%c0, %c0_0] : memref<8x128xbf16, #tpu.memory_space<vmem>>, vector<8x128xbf16>
    %c0_1 = arith.constant 0 : index
    %c0_2 = arith.constant 0 : index
    %1 = vector.load %arg2[%c0_1, %c0_2] : memref<128x128xbf16, #tpu.memory_space<vmem>>, vector<128x128xbf16>
    %cst = arith.constant dense<0.000000e+00> : vector<8x128xf32>
    %2 = tpu.matmul %0, %1, %cst {dimension_numbers = #tpu.dot_dimension_numbers<[1], [0], [0], [1], [0, 0, 1, 1], [], []>} : vector<8x128xbf16>, vector<128x128xbf16>, vector<8x128xf32> -> vector<8x128xf32>
    %c0_3 = arith.constant 0 : index
    %c0_4 = arith.constant 0 : index
    %3 = vector.load %arg3[%c0_3, %c0_4] : memref<1x128xf32, #tpu.memory_space<vmem>>, vector<1x128xf32>
    %4 = vector.broadcast %3 : vector<1x128xf32> to vector<8x128xf32>
    %5 = arith.addf %2, %4 : vector<8x128xf32>
    %cst_5 = arith.constant 0.000000e+00 : f32
    %6 = vector.broadcast %cst_5 : f32 to vector<8x128xf32>
    %7 = arith.maximumf %5, %6 : vector<8x128xf32>
    %8 = arith.truncf %7 : vector<8x128xf32> to vector<8x128xbf16>
    %c0_6 = arith.constant 0 : index
    %c0_7 = arith.constant 0 : index
    %9 = vector.load %arg4[%c0_6, %c0_7] : memref<128x128xbf16, #tpu.memory_space<vmem>>, vector<128x128xbf16>
    %cst_8 = arith.constant dense<0.000000e+00> : vector<8x128xf32>
    %10 = tpu.matmul %8, %9, %cst_8 {dimension_numbers = #tpu.dot_dimension_numbers<[1], [0], [0], [1], [0, 0, 1, 1], [], []>} : vector<8x128xbf16>, vector<128x128xbf16>, vector<8x128xf32> -> vector<8x128xf32>
    %c0_9 = arith.constant 0 : index
    %c0_10 = arith.constant 0 : index
    %11 = vector.load %arg5[%c0_9, %c0_10] : memref<1x128xf32, #tpu.memory_space<vmem>>, vector<1x128xf32>
    %12 = vector.broadcast %11 : vector<1x128xf32> to vector<8x128xf32>
    %13 = arith.addf %10, %12 : vector<8x128xf32>
    %cst_11 = arith.constant 0.000000e+00 : f32
    %14 = vector.broadcast %cst_11 : f32 to vector<8x128xf32>
    %15 = arith.maximumf %13, %14 : vector<8x128xf32>
    %16 = arith.truncf %15 : vector<8x128xf32> to vector<8x128xbf16>
    %c0_12 = arith.constant 0 : index
    %c0_13 = arith.constant 0 : index
    %17 = vector.load %arg6[%c0_12, %c0_13] : memref<128x128xbf16, #tpu.memory_space<vmem>>, vector<128x128xbf16>
    %cst_14 = arith.constant dense<0.000000e+00> : vector<8x128xf32>
    %18 = tpu.matmul %16, %17, %cst_14 {dimension_numbers = #tpu.dot_dimension_numbers<[1], [0], [0], [1], [0, 0, 1, 1], [], []>} : vector<8x128xbf16>, vector<128x128xbf16>, vector<8x128xf32> -> vector<8x128xf32>
    %c0_15 = arith.constant 0 : index
    %c0_16 = arith.constant 0 : index
    %19 = vector.load %arg7[%c0_15, %c0_16] : memref<1x128xf32, #tpu.memory_space<vmem>>, vector<1x128xf32>
    %20 = vector.broadcast %19 : vector<1x128xf32> to vector<8x128xf32>
    %21 = arith.addf %18, %20 : vector<8x128xf32>
    %cst_17 = arith.constant 0.000000e+00 : f32
    %22 = vector.broadcast %cst_17 : f32 to vector<8x128xf32>
    %23 = arith.maximumf %21, %22 : vector<8x128xf32>
    %24 = arith.truncf %23 : vector<8x128xf32> to vector<8x128xbf16>
    %c0_18 = arith.constant 0 : index
    %c0_19 = arith.constant 0 : index
    %25 = vector.load %arg8[%c0_18, %c0_19] : memref<128x128xbf16, #tpu.memory_space<vmem>>, vector<128x128xbf16>
    %cst_20 = arith.constant dense<0.000000e+00> : vector<8x128xf32>
    %26 = tpu.matmul %24, %25, %cst_20 {dimension_numbers = #tpu.dot_dimension_numbers<[1], [0], [0], [1], [0, 0, 1, 1], [], []>} : vector<8x128xbf16>, vector<128x128xbf16>, vector<8x128xf32> -> vector<8x128xf32>
    %c0_21 = arith.constant 0 : index
    %c0_22 = arith.constant 0 : index
    %27 = vector.load %arg9[%c0_21, %c0_22] : memref<1x128xf32, #tpu.memory_space<vmem>>, vector<1x128xf32>
    %28 = vector.broadcast %27 : vector<1x128xf32> to vector<8x128xf32>
    %29 = arith.addf %26, %28 : vector<8x128xf32>
    %cst_23 = arith.constant 0.000000e+00 : f32
    %30 = vector.broadcast %cst_23 : f32 to vector<8x128xf32>
    %31 = arith.maximumf %29, %30 : vector<8x128xf32>
    %32 = arith.truncf %31 : vector<8x128xf32> to vector<8x128xbf16>
    %c0_24 = arith.constant 0 : index
    %c0_25 = arith.constant 0 : index
    %33 = vector.load %arg10[%c0_24, %c0_25] : memref<128x128xbf16, #tpu.memory_space<vmem>>, vector<128x128xbf16>
    %cst_26 = arith.constant dense<0.000000e+00> : vector<8x128xf32>
    %34 = tpu.matmul %32, %33, %cst_26 {dimension_numbers = #tpu.dot_dimension_numbers<[1], [0], [0], [1], [0, 0, 1, 1], [], []>} : vector<8x128xbf16>, vector<128x128xbf16>, vector<8x128xf32> -> vector<8x128xf32>
    %c0_27 = arith.constant 0 : index
    %c0_28 = arith.constant 0 : index
    %35 = vector.load %arg11[%c0_27, %c0_28] : memref<1x128xf32, #tpu.memory_space<vmem>>, vector<1x128xf32>
    %36 = vector.broadcast %35 : vector<1x128xf32> to vector<8x128xf32>
    %37 = arith.addf %34, %36 : vector<8x128xf32>
    %cst_29 = arith.constant 0.000000e+00 : f32
    %38 = vector.broadcast %cst_29 : f32 to vector<8x128xf32>
    %39 = arith.maximumf %37, %38 : vector<8x128xf32>
    %40 = arith.truncf %39 : vector<8x128xf32> to vector<8x128xbf16>
    %c0_30 = arith.constant 0 : index
    %c0_31 = arith.constant 0 : index
    %41 = vector.load %arg12[%c0_30, %c0_31] : memref<128x128xbf16, #tpu.memory_space<vmem>>, vector<128x128xbf16>
    %cst_32 = arith.constant dense<0.000000e+00> : vector<8x128xf32>
    %42 = tpu.matmul %40, %41, %cst_32 {dimension_numbers = #tpu.dot_dimension_numbers<[1], [0], [0], [1], [0, 0, 1, 1], [], []>} : vector<8x128xbf16>, vector<128x128xbf16>, vector<8x128xf32> -> vector<8x128xf32>
    %c0_33 = arith.constant 0 : index
    %c0_34 = arith.constant 0 : index
    %43 = vector.load %arg13[%c0_33, %c0_34] : memref<1x128xf32, #tpu.memory_space<vmem>>, vector<1x128xf32>
    %44 = vector.broadcast %43 : vector<1x128xf32> to vector<8x128xf32>
    %45 = arith.addf %42, %44 : vector<8x128xf32>
    %cst_35 = arith.constant 0.000000e+00 : f32
    %46 = vector.broadcast %cst_35 : f32 to vector<8x128xf32>
    %47 = arith.maximumf %45, %46 : vector<8x128xf32>
    %48 = arith.truncf %47 : vector<8x128xf32> to vector<8x128xbf16>
    %c0_36 = arith.constant 0 : index
    %c0_37 = arith.constant 0 : index
    %49 = vector.load %arg14[%c0_36, %c0_37] : memref<128x128xbf16, #tpu.memory_space<vmem>>, vector<128x128xbf16>
    %cst_38 = arith.constant dense<0.000000e+00> : vector<8x128xf32>
    %50 = tpu.matmul %48, %49, %cst_38 {dimension_numbers = #tpu.dot_dimension_numbers<[1], [0], [0], [1], [0, 0, 1, 1], [], []>} : vector<8x128xbf16>, vector<128x128xbf16>, vector<8x128xf32> -> vector<8x128xf32>
    %c0_39 = arith.constant 0 : index
    %c0_40 = arith.constant 0 : index
    %51 = vector.load %arg15[%c0_39, %c0_40] : memref<1x128xf32, #tpu.memory_space<vmem>>, vector<1x128xf32>
    %52 = vector.broadcast %51 : vector<1x128xf32> to vector<8x128xf32>
    %53 = arith.addf %50, %52 : vector<8x128xf32>
    %cst_41 = arith.constant 0.000000e+00 : f32
    %54 = vector.broadcast %cst_41 : f32 to vector<8x128xf32>
    %55 = arith.maximumf %53, %54 : vector<8x128xf32>
    %56 = arith.truncf %55 : vector<8x128xf32> to vector<8x128xbf16>
    %c0_42 = arith.constant 0 : index
    %c0_43 = arith.constant 0 : index
    %57 = vector.load %arg16[%c0_42, %c0_43] : memref<128x128xbf16, #tpu.memory_space<vmem>>, vector<128x128xbf16>
    %cst_44 = arith.constant dense<0.000000e+00> : vector<8x128xf32>
    %58 = tpu.matmul %56, %57, %cst_44 {dimension_numbers = #tpu.dot_dimension_numbers<[1], [0], [0], [1], [0, 0, 1, 1], [], []>} : vector<8x128xbf16>, vector<128x128xbf16>, vector<8x128xf32> -> vector<8x128xf32>
    %c0_45 = arith.constant 0 : index
    %c0_46 = arith.constant 0 : index
    %59 = vector.load %arg17[%c0_45, %c0_46] : memref<1x128xf32, #tpu.memory_space<vmem>>, vector<1x128xf32>
    %60 = vector.broadcast %59 : vector<1x128xf32> to vector<8x128xf32>
    %61 = arith.addf %58, %60 : vector<8x128xf32>
    %62 = tpu.iota {dimensions = array<i32: 1>} : vector<8x128xi32>
    %c8_i32 = arith.constant 8 : i32
    %63 = vector.broadcast %c8_i32 : i32 to vector<8x128xi32>
    %64 = arith.cmpi slt, %62, %63 : vector<8x128xi32>
    %cst_47 = arith.constant -1.000000e+30 : f32
    %65 = vector.broadcast %cst_47 : f32 to vector<8x128xf32>
    %66 = arith.select %64, %61, %65 : vector<8x128xi1>, vector<8x128xf32>
    %cst_48 = arith.constant dense<0xFF800000> : vector<8xf32>
    %67 = vector.multi_reduction <maximumf>, %66, %cst_48 [1] : vector<8x128xf32> to vector<8xf32>
    %68 = vector.shape_cast %67 : vector<8xf32> to vector<8x1xf32>
    %69 = vector.broadcast %68 : vector<8x1xf32> to vector<8x128xf32>
    %70 = arith.subf %66, %69 : vector<8x128xf32>
    %71 = math.exp %70 : vector<8x128xf32>
    %cst_49 = arith.constant dense<0.000000e+00> : vector<8xf32>
    %72 = vector.multi_reduction <add>, %71, %cst_49 [1] : vector<8x128xf32> to vector<8xf32>
    %73 = vector.shape_cast %72 : vector<8xf32> to vector<8x1xf32>
    %74 = tpu.reciprocal %73 {approx = true} : vector<8x1xf32> -> vector<8x1xf32>
    %75 = vector.broadcast %74 : vector<8x1xf32> to vector<8x128xf32>
    %76 = arith.mulf %71, %75 : vector<8x128xf32>
    %c0_50 = arith.constant 0 : index
    %c0_51 = arith.constant 0 : index
    %77 = vector.load %arg18[%c0_50, %c0_51] : memref<8x128xf32, #tpu.memory_space<vmem>>, vector<8x128xf32>
    tpu.vector_store %arg18[%c0_50, %c0_51], %76 {strides = array<i32>} : memref<8x128xf32, #tpu.memory_space<vmem>>, vector<8x128xf32>,
    return
  }
  func.func @transform_0(%arg0: i32) -> (i32, i32) {
    %c0_i32 = arith.constant 0 : i32
    %c0_i32_0 = arith.constant 0 : i32
    return %arg0, %c0_i32 : i32, i32
  }
  func.func @transform_1(%arg0: i32) -> (i32, i32) {
    %c0_i32 = arith.constant 0 : i32
    %c0_i32_0 = arith.constant 0 : i32
    %c0_i32_1 = arith.constant 0 : i32
    return %c0_i32, %c0_i32_0 : i32, i32
  }
  func.func @transform_2(%arg0: i32) -> (i32, i32) {
    %c0_i32 = arith.constant 0 : i32
    %c0_i32_0 = arith.constant 0 : i32
    %c0_i32_1 = arith.constant 0 : i32
    return %c0_i32, %c0_i32_0 : i32, i32
  }
  func.func @transform_3(%arg0: i32) -> (i32, i32) {
    %c0_i32 = arith.constant 0 : i32
    %c0_i32_0 = arith.constant 0 : i32
    %c0_i32_1 = arith.constant 0 : i32
    return %c0_i32, %c0_i32_0 : i32, i32
  }
  func.func @transform_4(%arg0: i32) -> (i32, i32) {
    %c0_i32 = arith.constant 0 : i32
    %c0_i32_0 = arith.constant 0 : i32
    %c0_i32_1 = arith.constant 0 : i32
    return %c0_i32, %c0_i32_0 : i32, i32
  }
  func.func @transform_5(%arg0: i32) -> (i32, i32) {
    %c0_i32 = arith.constant 0 : i32
    %c0_i32_0 = arith.constant 0 : i32
    %c0_i32_1 = arith.constant 0 : i32
    return %c0_i32, %c0_i32_0 : i32, i32
  }
  func.func @transform_6(%arg0: i32) -> (i32, i32) {
    %c0_i32 = arith.constant 0 : i32
    %c0_i32_0 = arith.constant 0 : i32
    %c0_i32_1 = arith.constant 0 : i32
    return %c0_i32, %c0_i32_0 : i32, i32
  }
  func.func @transform_7(%arg0: i32) -> (i32, i32) {
    %c0_i32 = arith.constant 0 : i32
    %c0_i32_0 = arith.constant 0 : i32
    %c0_i32_1 = arith.constant 0 : i32
    return %c0_i32, %c0_i32_0 : i32, i32
  }
  func.func @transform_8(%arg0: i32) -> (i32, i32) {
    %c0_i32 = arith.constant 0 : i32
    %c0_i32_0 = arith.constant 0 : i32
    %c0_i32_1 = arith.constant 0 : i32
    return %c0_i32, %c0_i32_0 : i32, i32
  }
  func.func @transform_9(%arg0: i32) -> (i32, i32) {
    %c0_i32 = arith.constant 0 : i32
    %c0_i32_0 = arith.constant 0 : i32
    %c0_i32_1 = arith.constant 0 : i32
    return %c0_i32, %c0_i32_0 : i32, i32
  }
  func.func @transform_10(%arg0: i32) -> (i32, i32) {
    %c0_i32 = arith.constant 0 : i32
    %c0_i32_0 = arith.constant 0 : i32
    %c0_i32_1 = arith.constant 0 : i32
    return %c0_i32, %c0_i32_0 : i32, i32
  }
  func.func @transform_11(%arg0: i32) -> (i32, i32) {
    %c0_i32 = arith.constant 0 : i32
    %c0_i32_0 = arith.constant 0 : i32
    %c0_i32_1 = arith.constant 0 : i32
    return %c0_i32, %c0_i32_0 : i32, i32
  }
  func.func @transform_12(%arg0: i32) -> (i32, i32) {
    %c0_i32 = arith.constant 0 : i32
    %c0_i32_0 = arith.constant 0 : i32
    %c0_i32_1 = arith.constant 0 : i32
    return %c0_i32, %c0_i32_0 : i32, i32
  }
  func.func @transform_13(%arg0: i32) -> (i32, i32) {
    %c0_i32 = arith.constant 0 : i32
    %c0_i32_0 = arith.constant 0 : i32
    %c0_i32_1 = arith.constant 0 : i32
    return %c0_i32, %c0_i32_0 : i32, i32
  }
  func.func @transform_14(%arg0: i32) -> (i32, i32) {
    %c0_i32 = arith.constant 0 : i32
    %c0_i32_0 = arith.constant 0 : i32
    %c0_i32_1 = arith.constant 0 : i32
    return %c0_i32, %c0_i32_0 : i32, i32
  }
  func.func @transform_15(%arg0: i32) -> (i32, i32) {
    %c0_i32 = arith.constant 0 : i32
    %c0_i32_0 = arith.constant 0 : i32
    %c0_i32_1 = arith.constant 0 : i32
    return %c0_i32, %c0_i32_0 : i32, i32
  }
  func.func @transform_16(%arg0: i32) -> (i32, i32) {
    %c0_i32 = arith.constant 0 : i32
    %c0_i32_0 = arith.constant 0 : i32
    %c0_i32_1 = arith.constant 0 : i32
    return %c0_i32, %c0_i32_0 : i32, i32
  }
  func.func @transform_17(%arg0: i32) -> (i32, i32) {
    %c0_i32 = arith.constant 0 : i32
    %c0_i32_0 = arith.constant 0 : i32
    return %arg0, %c0_i32 : i32, i32
  }
}

</mosaic_0001>

<bundles_post_ra>
// kernel: tpu_custom_call.1
= control target key start
LH: loop header
LB: loop body
LE: loop exit
PB: predicated region body
PF: predicated region fallthrough
CT: control target
= control target key end

     0   :  { %s2084_s0 = inlined_call_operand.hbm [shape: bf16[8,128], index: 0, kind: input, shape index: {}]   ;;  %s2085_s1 = inlined_call_operand.hbm [shape: bf16[128,128], index: 1, kind: input, shape index: {}]   ;;  %s2086_s2 = inlined_call_operand.vmem [shape: f32[1,128], index: 2, kind: input, shape index: {}]   ;;  %s2087_s3 = inlined_call_operand.hbm [shape: bf16[128,128], index: 3, kind: input, shape index: {}]   ;;  %s2088_s4 = inlined_call_operand.vmem [shape: f32[1,128], index: 4, kind: input, shape index: {}]   ;;  %s2089_s5 = inlined_call_operand.hbm [shape: bf16[128,128], index: 5, kind: input, shape index: {}]   ;;  %s2090_s6 = inlined_call_operand.vmem [shape: f32[1,128], index: 6, kind: input, shape index: {}]   ;;  %s2091_s7 = inlined_call_operand.hbm [shape: bf16[128,128], index: 7, kind: input, shape index: {}]   ;;  %s2092_s8 = inlined_call_operand.vmem [shape: f32[1,128], index: 8, kind: input, shape index: {}]   ;;  %s2093_s9 = inlined_call_operand.hbm [shape: bf16[128,128], index: 9, kind: input, shape index: {}]   ;;  %s2094_s10 = inlined_call_operand.vmem [shape: f32[1,128], index: 10, kind: input, shape index: {}]   ;;  %s2095_s11 = inlined_call_operand.hbm [shape: bf16[128,128], index: 11, kind: input, shape index: {}]   ;;  %s2096_s12 = inlined_call_operand.vmem [shape: f32[1,128], index: 12, kind: input, shape index: {}]   ;;  %s2097_s13 = inlined_call_operand.hbm [shape: bf16[128,128], index: 13, kind: input, shape index: {}]   ;;  %s2098_s14 = inlined_call_operand.vmem [shape: f32[1,128], index: 14, kind: input, shape index: {}]   ;;  %s2099_s15 = inlined_call_operand.hbm [shape: bf16[128,128], index: 15, kind: input, shape index: {}]   ;;  %s2100_s16 = inlined_call_operand.vmem [shape: f32[1,128], index: 16, kind: input, shape index: {}]   ;;  %s2101_s17 = inlined_call_operand.hbm [shape: f32[8,128], index: 17, kind: output, shape index: {}]  }
   0x1   :  { %2105 = sst [smem:[#allocation24_spill]] %s2084_s0 }
   0x2   :  { %2106 = sst [smem:[#allocation25_spill]] %s2085_s1 }
   0x3   :  { %2107 = sst [smem:[#allocation26_spill]] %s2100_s16 }
   0x4   :  { %2108 = sst [smem:[#allocation27_spill]] %s2101_s17 }
   0x5   :  { %22 = vsyncpa [#allocation3], 0 }
   0x6   :  { %23 = vsyncpa [#allocation6], 0 }
   0x7   :  { %24 = vsyncpa [#allocation9], 0 }
   0x8   :  { %25 = vsyncpa [#allocation12], 0 }
   0x9   :  { %26 = vsyncpa [#allocation15], 0 }
   0xa   :  { %27 = vsyncpa [#allocation4], 0  ;;  %s1732_s24 = smov [#allocation5]   ;;  %s2109_s28 = sld [smem:[#allocation25_spill]] }
   0xb   :  { %s43_s25 = sshll.u32 %s1732_s24, 4  ;;  %s44_s25 = int_to_ptr.vmem [resolvable:$true] %s43_s25 }
  0x10   :  { %s1500_s29 = scalar_lea.hbm %s2109_s28, 1024 }
  0x11   :  { %p1501_p0 = scmp.ne.s32.totalorder %s2109_s28, %s1500_s29  ;;  %p1504_p1 = scmp.lt.u32.totalorder %s1500_s29, %s2109_s28 }
  0x13   :  { %p1506_p2 = pnand %p1504_p1, %p1501_p0 }
  0x15   :  { %1509 = shalt.err (!%p1506_p2)
}
  0x16   :  { %s1510_s1 = scalar_lea.vmem %s44_s25, 1024  ;;  %p1515_p4 = scmp.lt.s32.totalorder %s44_s25, %s44_s25 }
  0x17   :  { %p1511_p3 = scmp.ne.s32.totalorder %s44_s25, %s1510_s1  ;;  %p1516_p5 = scmp.lt.s32.totalorder %s1510_s1, %s1510_s1 }
  0x19   :  { %p1517_p6 = por %p1516_p5, %p1515_p4 }
  0x1b   :  { %p1518_p7 = pnand %p1517_p6, %p1511_p3 }
  0x1d   :  { %1521 = shalt.err (!%p1518_p7)
}
  0x1e   :  { %s1733_s20 = smov 64   ;;  %s1734_s21 = smov 4  }
  0x1f   :  { %49 = dma.hbm_to_vmem [thread:$0]  %s2109_s28, 1024, %s44_s25, [#allocation6], %s1733_s20, %s1733_s20, %s1734_s21  }
  0x20   :  { %s1735_s24 = smov [#allocation8]   ;;  %s1736_s27 = smov [#allocation11]  }
  0x21   :  { %s71_s26 = sshll.u32 %s1735_s24, 4  ;;  %s99_s29 = sshll.u32 %s1736_s27, 4  ;;  %s72_s26 = int_to_ptr.vmem [resolvable:$true] %s71_s26  ;;  %s100_s29 = int_to_ptr.vmem [resolvable:$true] %s99_s29 }
  0x22   :  { %s1522_s18 = scalar_lea.hbm %s2089_s5, 1024 }
  0x23   :  { %p1523_p8 = scmp.ne.s32.totalorder %s2089_s5, %s1522_s18  ;;  %p1526_p9 = scmp.lt.u32.totalorder %s1522_s18, %s2089_s5 }
  0x25   :  { %p1528_p10 = pnand %p1526_p9, %p1523_p8 }
  0x27   :  { %1531 = shalt.err (!%p1528_p10)
}
  0x28   :  { %s1532_s25 = scalar_lea.vmem %s72_s26, 1024  ;;  %p1537_p12 = scmp.lt.s32.totalorder %s72_s26, %s72_s26 }
  0x29   :  { %p1533_p11 = scmp.ne.s32.totalorder %s72_s26, %s1532_s25  ;;  %p1538_p13 = scmp.lt.s32.totalorder %s1532_s25, %s1532_s25 }
  0x2b   :  { %p1539_p0 = por %p1538_p13, %p1537_p12 }
  0x2d   :  { %p1540_p1 = pnand %p1539_p0, %p1533_p11 }
  0x2f   :  { %1543 = shalt.err (!%p1540_p1)
}
  0x30   :  { %77 = dma.hbm_to_vmem [thread:$0]  %s2089_s5, 1024, %s72_s26, [#allocation9], %s1733_s20, %s1733_s20, %s1734_s21  }
  0x31   :  { %s1544_s17 = scalar_lea.hbm %s2093_s9, 1024 }
  0x32   :  { %p1545_p2 = scmp.ne.s32.totalorder %s2093_s9, %s1544_s17  ;;  %p1548_p3 = scmp.lt.u32.totalorder %s1544_s17, %s2093_s9 }
  0x34   :  { %p1550_p4 = pnand %p1548_p3, %p1545_p2 }
  0x36   :  { %1553 = shalt.err (!%p1550_p4)
}
  0x37   :  { %s1554_s18 = scalar_lea.vmem %s100_s29, 1024  ;;  %p1559_p6 = scmp.lt.s32.totalorder %s100_s29, %s100_s29 }
  0x38   :  { %p1555_p5 = scmp.ne.s32.totalorder %s100_s29, %s1554_s18  ;;  %p1560_p7 = scmp.lt.s32.totalorder %s1554_s18, %s1554_s18 }
  0x3a   :  { %p1561_p8 = por %p1560_p7, %p1559_p6 }
  0x3c   :  { %p1562_p9 = pnand %p1561_p8, %p1555_p5 }
  0x3e   :  { %1565 = shalt.err (!%p1562_p9)
}
  0x3f   :  { %105 = dma.hbm_to_vmem [thread:$0]  %s2093_s9, 1024, %s100_s29, [#allocation12], %s1733_s20, %s1733_s20, %s1734_s21  }
  0x40   :  { %s1737_s19 = smov [#allocation14]   ;;  %s1738_s25 = smov [#allocation2]  }
  0x41   :  { %s127_s1 = sshll.u32 %s1737_s19, 4  ;;  %s34_s28 = sshll.u32 %s1738_s25, 4  ;;  %s128_s1 = int_to_ptr.vmem [resolvable:$true] %s127_s1  ;;  %s35_s28 = int_to_ptr.vmem [resolvable:$true] %s34_s28 }
  0x42   :  { %s1566_s16 = scalar_lea.hbm %s2097_s13, 1024 }
  0x43   :  { %p1567_p10 = scmp.ne.s32.totalorder %s2097_s13, %s1566_s16  ;;  %p1570_p11 = scmp.lt.u32.totalorder %s1566_s16, %s2097_s13 }
  0x45   :  { %p1572_p12 = pnand %p1570_p11, %p1567_p10 }
  0x47   :  { %1575 = shalt.err (!%p1572_p12)
}
  0x48   :  { %s1576_s9 = scalar_lea.vmem %s128_s1, 1024  ;;  %p1581_p0 = scmp.lt.s32.totalorder %s128_s1, %s128_s1 }
  0x49   :  { %p1577_p13 = scmp.ne.s32.totalorder %s128_s1, %s1576_s9  ;;  %p1582_p1 = scmp.lt.s32.totalorder %s1576_s9, %s1576_s9 }
  0x4b   :  { %p1583_p2 = por %p1582_p1, %p1581_p0 }
  0x4d   :  { %p1584_p3 = pnand %p1583_p2, %p1577_p13 }
  0x4f   :  { %1587 = shalt.err (!%p1584_p3)
}
  0x50   :  { %133 = dma.hbm_to_vmem [thread:$0]  %s2097_s13, 1024, %s128_s1, [#allocation15], %s1733_s20, %s1733_s20, %s1734_s21  }
  0x51   :  { %s2110_s26 = sld [smem:[#allocation24_spill]] }
  0x57   :  { %s1588_s19 = scalar_lea.hbm %s2110_s26, 64 }
  0x58   :  { %p1589_p4 = scmp.ne.s32.totalorder %s2110_s26, %s1588_s19  ;;  %p1592_p5 = scmp.lt.u32.totalorder %s1588_s19, %s2110_s26 }
  0x5a   :  { %p1594_p6 = pnand %p1592_p5, %p1589_p4 }
  0x5c   :  { %1597 = shalt.err (!%p1594_p6)
}
  0x5d   :  { %s1598_s17 = scalar_lea.vmem %s35_s28, 64  ;;  %p1603_p8 = scmp.lt.s32.totalorder %s35_s28, %s35_s28 }
  0x5e   :  { %p1599_p7 = scmp.ne.s32.totalorder %s35_s28, %s1598_s17  ;;  %p1604_p9 = scmp.lt.s32.totalorder %s1598_s17, %s1598_s17 }
  0x60   :  { %p1605_p10 = por %p1604_p9, %p1603_p8 }
  0x62   :  { %p1606_p11 = pnand %p1605_p10, %p1599_p7 }
  0x64   :  { %1609 = shalt.err (!%p1606_p11)
}
  0x65   :  { %37 = dma.hbm_to_vmem [thread:$0]  %s2110_s26, 64, %s35_s28, [#allocation3]  }
  0x66   :  { %s1739_s24 = smov [#allocation7]   ;;  %s1740_s0 = smov [#allocation10]  }
  0x67   :  { %s57_s27 = sshll.u32 %s1739_s24, 4  ;;  %s85_s9 = sshll.u32 %s1740_s0, 4  ;;  %s58_s27 = int_to_ptr.vmem [resolvable:$true] %s57_s27  ;;  %s86_s9 = int_to_ptr.vmem [resolvable:$true] %s85_s9 }
  0x68   :  { %s1610_s18 = scalar_lea.hbm %s2087_s3, 1024 }
  0x69   :  { %p1611_p12 = scmp.ne.s32.totalorder %s2087_s3, %s1610_s18  ;;  %p1614_p13 = scmp.lt.u32.totalorder %s1610_s18, %s2087_s3 }
  0x6b   :  { %p1616_p0 = pnand %p1614_p13, %p1611_p12 }
  0x6d   :  { %1619 = shalt.err (!%p1616_p0)
}
  0x6e   :  { %s1620_s28 = scalar_lea.vmem %s58_s27, 1024  ;;  %p1625_p2 = scmp.lt.s32.totalorder %s58_s27, %s58_s27 }
  0x6f   :  { %p1621_p1 = scmp.ne.s32.totalorder %s58_s27, %s1620_s28  ;;  %p1626_p3 = scmp.lt.s32.totalorder %s1620_s28, %s1620_s28 }
  0x71   :  { %p1627_p4 = por %p1626_p3, %p1625_p2 }
  0x73   :  { %p1628_p5 = pnand %p1627_p4, %p1621_p1 }
  0x75   :  { %1631 = shalt.err (!%p1628_p5)
}
  0x76   :  { %63 = dma.hbm_to_vmem [thread:$0]  %s2087_s3, 1024, %s58_s27, [#allocation6], %s1733_s20, %s1733_s20, %s1734_s21  }
  0x77   :  { %s1632_s13 = scalar_lea.hbm %s2091_s7, 1024 }
  0x78   :  { %p1633_p6 = scmp.ne.s32.totalorder %s2091_s7, %s1632_s13  ;;  %p1636_p7 = scmp.lt.u32.totalorder %s1632_s13, %s2091_s7 }
  0x7a   :  { %p1638_p8 = pnand %p1636_p7, %p1633_p6 }
  0x7c   :  { %1641 = shalt.err (!%p1638_p8)
}
  0x7d   :  { %s1642_s30 = scalar_lea.vmem %s86_s9, 1024  ;;  %p1647_p10 = scmp.lt.s32.totalorder %s86_s9, %s86_s9 }
  0x7e   :  { %p1643_p9 = scmp.ne.s32.totalorder %s86_s9, %s1642_s30  ;;  %p1648_p11 = scmp.lt.s32.totalorder %s1642_s30, %s1642_s30 }
  0x80   :  { %p1649_p12 = por %p1648_p11, %p1647_p10 }
  0x82   :  { %p1650_p13 = pnand %p1649_p12, %p1643_p9 }
  0x84   :  { %1653 = shalt.err (!%p1650_p13)
}
  0x85   :  { %91 = dma.hbm_to_vmem [thread:$0]  %s2091_s7, 1024, %s86_s9, [#allocation9], %s1733_s20, %s1733_s20, %s1734_s21  }
  0x86   :  { %s1741_s18 = smov [#allocation13]   ;;  %s1742_s19 = smov [#allocation16]  }
  0x87   :  { %s113_s5 = sshll.u32 %s1741_s18, 4  ;;  %s141_s25 = sshll.u32 %s1742_s19, 4  ;;  %s114_s5 = int_to_ptr.vmem [resolvable:$true] %s113_s5  ;;  %s142_s25 = int_to_ptr.vmem [resolvable:$true] %s141_s25 }
  0x88   :  { %s1654_s26 = scalar_lea.hbm %s2095_s11, 1024 }
  0x89   :  { %p1655_p0 = scmp.ne.s32.totalorder %s2095_s11, %s1654_s26  ;;  %p1658_p1 = scmp.lt.u32.totalorder %s1654_s26, %s2095_s11 }
  0x8b   :  { %p1660_p2 = pnand %p1658_p1, %p1655_p0 }
  0x8d   :  { %1663 = shalt.err (!%p1660_p2)
}
  0x8e   :  { %s1664_s7 = scalar_lea.vmem %s114_s5, 1024  ;;  %p1669_p4 = scmp.lt.s32.totalorder %s114_s5, %s114_s5 }
  0x8f   :  { %p1665_p3 = scmp.ne.s32.totalorder %s114_s5, %s1664_s7  ;;  %p1670_p5 = scmp.lt.s32.totalorder %s1664_s7, %s1664_s7 }
  0x91   :  { %p1671_p6 = por %p1670_p5, %p1669_p4 }
  0x93   :  { %p1672_p7 = pnand %p1671_p6, %p1665_p3 }
  0x95   :  { %1675 = shalt.err (!%p1672_p7)
}
  0x96   :  { %119 = dma.hbm_to_vmem [thread:$0]  %s2095_s11, 1024, %s114_s5, [#allocation12], %s1733_s20, %s1733_s20, %s1734_s21  }
  0x97   :  { %s1676_s29 = scalar_lea.hbm %s2099_s15, 1024 }
  0x98   :  { %p1677_p8 = scmp.ne.s32.totalorder %s2099_s15, %s1676_s29  ;;  %p1680_p9 = scmp.lt.u32.totalorder %s1676_s29, %s2099_s15 }
  0x9a   :  { %p1682_p10 = pnand %p1680_p9, %p1677_p8 }
  0x9c   :  { %1685 = shalt.err (!%p1682_p10)
}
  0x9d   :  { %s1686_s19 = scalar_lea.vmem %s142_s25, 1024  ;;  %p1691_p12 = scmp.lt.s32.totalorder %s142_s25, %s142_s25 }
  0x9e   :  { %p1687_p11 = scmp.ne.s32.totalorder %s142_s25, %s1686_s19  ;;  %p1692_p13 = scmp.lt.s32.totalorder %s1686_s19, %s1686_s19 }
  0xa0   :  { %p1693_p0 = por %p1692_p13, %p1691_p12 }
  0xa2   :  { %p1694_p1 = pnand %p1693_p0, %p1687_p11 }
  0xa4   :  { %1697 = shalt.err (!%p1694_p1)
}
  0xa5   :  { %147 = dma.hbm_to_vmem [thread:$0]  %s2099_s15, 1024, %s142_s25, [#allocation15], %s1733_s20, %s1733_s20, %s1734_s21  }
  0xa6   :  { %1720 = dma.done.wait [#allocation3], 64  }
  0xa7   :  { %1721 = vsyncadd [#allocation3], 4294967232 }
  0xa8   :  { %1722 = dma.done.wait [#allocation6], 2048  }
  0xa9   :  { %1723 = vsyncadd [#allocation6], 4294965248 }
  0xaa   :  { %1724 = dma.done.wait [#allocation9], 2048  }
  0xab   :  { %1725 = vsyncadd [#allocation9], 4294965248 }
  0xac   :  { %1726 = dma.done.wait [#allocation12], 2048  }
  0xad   :  { %1727 = vsyncadd [#allocation12], 4294965248 }
  0xae   :  { %1728 = dma.done.wait [#allocation15], 2048  }
  0xaf   :  { %1729 = vsyncadd [#allocation15], 4294965248  ;;  %v1743_v0 = vmov 0.0   ;;  %vm1744_vm0 = vmmov 0   ;;  %v1432_v1 = vld [vmem:[#allocation5] sm:$0xff]   ;;  %v1433_v2 = vld [vmem:[#allocation5 + $0x8] sm:$0xff]  }
  0xb0   :  { %1258 = vmatprep.subr.bf16.mxu0 %v1743_v0  ;;  %1274 = vmatprep.mubr.msk.bf16.mxu0 %vm1744_vm0, %v1743_v0  ;;  %v1434_v3 = vld [vmem:[#allocation5 + $0x10] sm:$0xff]   ;;  %v1440_v4 = vld [vmem:[#allocation7] sm:$0xff]   ;;  %v1435_v5 = vld [vmem:[#allocation5 + $0x18] sm:$0xff]   ;;  %s2111_s13 = sld [smem:[#allocation26_spill]] }
  0xb1   :  { %1278 = vmatprep.subr.bf16.mxu1 %v1743_v0  ;;  %1294 = vmatprep.mubr.msk.bf16.mxu1 %vm1744_vm0, %v1743_v0  ;;  %v1441_v6 = vld [vmem:[#allocation7 + $0x8] sm:$0xff]   ;;  %v1436_v7 = vld [vmem:[#allocation5 + $0x20] sm:$0xff]   ;;  %v1442_v8 = vld [vmem:[#allocation7 + $0x10] sm:$0xff]  }
  0xb2   :  { %1259 = vmatpush3.bf16.msra.mxu0 %v1432_v1  ;;  %1279 = vmatpush3.bf16.msra.mxu1 %v1440_v4  ;;  %v1437_v9 = vld [vmem:[#allocation5 + $0x28] sm:$0xff]   ;;  %v1443_v10 = vld [vmem:[#allocation7 + $0x18] sm:$0xff]   ;;  %v1438_v11 = vld [vmem:[#allocation5 + $0x30] sm:$0xff]  }
  0xb3   :  { %1260 = vmatprep.subr.bf16.mxu0 %v1743_v0  ;;  %1280 = vmatprep.subr.bf16.mxu1 %v1743_v0  ;;  %v1444_v12 = vld [vmem:[#allocation7 + $0x20] sm:$0xff]   ;;  %v1439_v13 = vld [vmem:[#allocation5 + $0x38] sm:$0xff]   ;;  %v1445_v14 = vld [vmem:[#allocation7 + $0x28] sm:$0xff]  }
  0xb4   :  { %v178_v15 = vld [vmem:[#allocation2] sm:$0xf]  ;;  %v1446_v16 = vld [vmem:[#allocation7 + $0x30] sm:$0xff]   ;;  %v1448_v18 = vld [vmem:[#allocation8] sm:$0xff]  }
  0xb5   :  { %v1447_v17 = vld [vmem:[#allocation7 + $0x38] sm:$0xff]   ;;  %v1449_v19 = vld [vmem:[#allocation8 + $0x8] sm:$0xff]   ;;  %v1450_v20 = vld [vmem:[#allocation8 + $0x10] sm:$0xff]  }
  0xb6   :  { %1261 = vmatpush3.bf16.msra.mxu0 %v1433_v2  ;;  %1281 = vmatpush3.bf16.msra.mxu1 %v1441_v6  ;;  %v1451_v21 = vld [vmem:[#allocation8 + $0x18] sm:$0xff]   ;;  %v1452_v22 = vld [vmem:[#allocation8 + $0x20] sm:$0xff]   ;;  %v1453_v23 = vld [vmem:[#allocation8 + $0x28] sm:$0xff]  }
  0xb7   :  { %1262 = vmatprep.subr.bf16.mxu0 %v1743_v0  ;;  %1282 = vmatprep.subr.bf16.mxu1 %v1743_v0  ;;  %v1114_v24 = vld [vmem:[%s2086_s2] ss:$0 sm:$0xff]  ;;  %v1454_v32 = vld [vmem:[#allocation8 + $0x30] sm:$0xff]   ;;  %v1456_v34 = vld [vmem:[#allocation10] sm:$0xff]  }
  0xb8   :  { %v1455_v33 = vld [vmem:[#allocation8 + $0x38] sm:$0xff]   ;;  %v1457_v35 = vld [vmem:[#allocation10 + $0x8] sm:$0xff]   ;;  %v1458_v36 = vld [vmem:[#allocation10 + $0x10] sm:$0xff]  }
  0xb9   :  { %v1459_v37 = vld [vmem:[#allocation10 + $0x18] sm:$0xff]   ;;  %v1460_v38 = vld [vmem:[#allocation10 + $0x20] sm:$0xff]   ;;  %v1461_v39 = vld [vmem:[#allocation10 + $0x28] sm:$0xff]  }
  0xba   :  { %1263 = vmatpush3.bf16.msra.mxu0 %v1434_v3  ;;  %1283 = vmatpush3.bf16.msra.mxu1 %v1442_v8  ;;  %v1123_v40 = vld [vmem:[%s2088_s4] ss:$0 sm:$0xff]  ;;  %v1462_v48 = vld [vmem:[#allocation10 + $0x30] sm:$0xff]   ;;  %v1464_v50 = vld [vmem:[#allocation11] sm:$0xff]  }
  0xbb   :  { %1264 = vmatprep.subr.bf16.mxu0 %v1743_v0  ;;  %1284 = vmatprep.subr.bf16.mxu1 %v1743_v0  ;;  %v1463_v49 = vld [vmem:[#allocation10 + $0x38] sm:$0xff]   ;;  %v1465_v51 = vld [vmem:[#allocation11 + $0x8] sm:$0xff]   ;;  %v1466_v52 = vld [vmem:[#allocation11 + $0x10] sm:$0xff]  }
  0xbc   :  { %v1467_v53 = vld [vmem:[#allocation11 + $0x18] sm:$0xff]   ;;  %v1468_v54 = vld [vmem:[#allocation11 + $0x20] sm:$0xff]   ;;  %v1469_v55 = vld [vmem:[#allocation11 + $0x28] sm:$0xff]  }
  0xbd   :  { %v1132_v56 = vld [vmem:[%s2090_s6] ss:$0 sm:$0xff]  ;;  %v1470_v1 = vld [vmem:[#allocation11 + $0x30] sm:$0xff]   ;;  %v1472_v3 = vld [vmem:[#allocation13] sm:$0xff]  }
  0xbe   :  { %1265 = vmatpush3.bf16.msra.mxu0 %v1435_v5  ;;  %1285 = vmatpush3.bf16.msra.mxu1 %v1443_v10  ;;  %v1471_v2 = vld [vmem:[#allocation11 + $0x38] sm:$0xff]   ;;  %v1473_v4 = vld [vmem:[#allocation13 + $0x8] sm:$0xff]   ;;  %v1474_v5 = vld [vmem:[#allocation13 + $0x10] sm:$0xff]  }
  0xbf   :  { %1266 = vmatprep.subr.bf16.mxu0 %v1743_v0  ;;  %1286 = vmatprep.subr.bf16.mxu1 %v1743_v0  ;;  %v1475_v6 = vld [vmem:[#allocation13 + $0x18] sm:$0xff]   ;;  %v1477_v8 = vld [vmem:[#allocation13 + $0x28] sm:$0xff]  }
  0xc2   :  { %1267 = vmatpush3.bf16.msra.mxu0 %v1436_v7  ;;  %1287 = vmatpush3.bf16.msra.mxu1 %v1444_v12  ;;  %v1476_v7 = vld [vmem:[#allocation13 + $0x20] sm:$0xff]  }
  0xc3   :  { %1268 = vmatprep.subr.bf16.mxu0 %v1743_v0  ;;  %1288 = vmatprep.subr.bf16.mxu1 %v1743_v0 }
  0xc6   :  { %1269 = vmatpush3.bf16.msra.mxu0 %v1437_v9  ;;  %1289 = vmatpush3.bf16.msra.mxu1 %v1445_v14  ;;  %v1141_v9 = vld [vmem:[%s2092_s8] ss:$0 sm:$0xff] }
  0xc7   :  { %1270 = vmatprep.subr.bf16.mxu0 %v1743_v0  ;;  %1290 = vmatprep.subr.bf16.mxu1 %v1743_v0 }
  0xca   :  { %1271 = vmatpush3.bf16.msra.mxu0 %v1438_v11  ;;  %1291 = vmatpush3.bf16.msra.mxu1 %v1446_v16 }
  0xcb   :  { %1272 = vmatprep.subr.bf16.mxu0 %v1743_v0  ;;  %1292 = vmatprep.subr.bf16.mxu1 %v1743_v0 }
  0xce   :  { %1273 = vmatpush3.bf16.msra.mxu0 %v1439_v13  ;;  %1293 = vmatpush3.bf16.msra.mxu1 %v1447_v17  ;;  %v1478_v17 = vld [vmem:[#allocation13 + $0x30] sm:$0xff]  }
  0xcf   :  { %1298 = vmatprep.subr.bf16.mxu0 %v1743_v0  ;;  %1318 = vmatprep.subr.bf16.mxu1 %v1743_v0 }
  0xd1   :  { %1275 = vmatmul.mubr.bf16.vlgmr.msra.gmra.mrb[0].mxu0 %v178_v15 }
  0xd2   :  { %1314 = vmatprep.mubr.msk.bf16.mxu0 %vm1744_vm0, %v1743_v0  ;;  %1299 = vmatpush3.bf16.msra.mxu0 %v1448_v18  ;;  %v1479_v18 = vld [vmem:[#allocation13 + $0x38] sm:$0xff]  }
  0xd3   :  { %1300 = vmatprep.subr.bf16.mxu0 %v1743_v0 }
  0xd6   :  { %1301 = vmatpush3.bf16.msra.mxu0 %v1449_v19  ;;  %v1480_v19 = vld [vmem:[#allocation14] sm:$0xff]  }
  0xd7   :  { %1302 = vmatprep.subr.bf16.mxu0 %v1743_v0 }
  0xda   :  { %1303 = vmatpush3.bf16.msra.mxu0 %v1450_v20  ;;  %v1481_v20 = vld [vmem:[#allocation14 + $0x8] sm:$0xff]  }
  0xdb   :  { %1304 = vmatprep.subr.bf16.mxu0 %v1743_v0 }
  0xde   :  { %1305 = vmatpush3.bf16.msra.mxu0 %v1451_v21  ;;  %v1482_v21 = vld [vmem:[#allocation14 + $0x10] sm:$0xff]  }
  0xdf   :  { %1306 = vmatprep.subr.bf16.mxu0 %v1743_v0 }
  0xe2   :  { %1307 = vmatpush3.bf16.msra.mxu0 %v1452_v22  ;;  %v1483_v22 = vld [vmem:[#allocation14 + $0x18] sm:$0xff]  }
  0xe3   :  { %1308 = vmatprep.subr.bf16.mxu0 %v1743_v0 }
  0xe6   :  { %1309 = vmatpush3.bf16.msra.mxu0 %v1453_v23  ;;  %v1484_v23 = vld [vmem:[#allocation14 + $0x20] sm:$0xff]  }
  0xe7   :  { %1310 = vmatprep.subr.bf16.mxu0 %v1743_v0 }
  0xea   :  { %1311 = vmatpush3.bf16.msra.mxu0 %v1454_v32 }
  0xeb   :  { %1312 = vmatprep.subr.bf16.mxu0 %v1743_v0 }
  0xee   :  { %1313 = vmatpush3.bf16.msra.mxu0 %v1455_v33  ;;  %v1486_v33 = vld [vmem:[#allocation14 + $0x30] sm:$0xff]  }
  0xef   :  { %1338 = vmatprep.subr.bf16.mxu0 %v1743_v0 }
 0x1a4   :  { %v284_v25 = vpop.f32.mrb[0].mxu0 }
 0x1a5   :  { %v285_v26 = vadd.f32 %v1114_v24, %v284_v25  ;;  %v1276_v27 = vpop.f32.mrb[1].mxu0  ;;  %v1485_v24 = vld [vmem:[#allocation14 + $0x28] sm:$0xff]   ;;  %v1150_v25 = vld [vmem:[%s2094_s10] ss:$0 sm:$0xff] }
 0x1a6   :  { %v287_v28 = vpop.f32.mrb[2].mxu0 }
 0x1a7   :  { %v290_v29 = vmax.f32 %v285_v26, 0.0  ;;  %v1277_v30 = vpop.f32.mrb[3].mxu0 }
 0x1a9   :  { %v291_v31 = vpack.c.bf16 %v290_v29, %v290_v29 }
 0x1ab   :  { %1295 = vmatmul.mubr.bf16.vlgmr.msra.gmra.mrb[0].mxu1 %v291_v31 }
 0x1ac   :  { %1334 = vmatprep.mubr.msk.bf16.mxu1 %vm1744_vm0, %v1743_v0  ;;  %1319 = vmatpush3.bf16.msra.mxu1 %v1456_v34  ;;  %v1487_v34 = vld [vmem:[#allocation14 + $0x38] sm:$0xff]  }
 0x1ad   :  { %1320 = vmatprep.subr.bf16.mxu1 %v1743_v0 }
 0x1b0   :  { %1321 = vmatpush3.bf16.msra.mxu1 %v1457_v35  ;;  %v1488_v35 = vld [vmem:[#allocation16] sm:$0xff]  }
 0x1b1   :  { %1322 = vmatprep.subr.bf16.mxu1 %v1743_v0 }
 0x1b4   :  { %1323 = vmatpush3.bf16.msra.mxu1 %v1458_v36  ;;  %v1489_v36 = vld [vmem:[#allocation16 + $0x8] sm:$0xff]  }
 0x1b5   :  { %1324 = vmatprep.subr.bf16.mxu1 %v1743_v0 }
 0x1b8   :  { %1325 = vmatpush3.bf16.msra.mxu1 %v1459_v37  ;;  %v1490_v37 = vld [vmem:[#allocation16 + $0x10] sm:$0xff]  }
 0x1b9   :  { %1326 = vmatprep.subr.bf16.mxu1 %v1743_v0 }
 0x1bc   :  { %1327 = vmatpush3.bf16.msra.mxu1 %v1460_v38  ;;  %v1491_v38 = vld [vmem:[#allocation16 + $0x18] sm:$0xff]  }
 0x1bd   :  { %1328 = vmatprep.subr.bf16.mxu1 %v1743_v0 }
 0x1c0   :  { %1329 = vmatpush3.bf16.msra.mxu1 %v1461_v39  ;;  %v1492_v39 = vld [vmem:[#allocation16 + $0x20] sm:$0xff]  }
 0x1c1   :  { %1330 = vmatprep.subr.bf16.mxu1 %v1743_v0 }
 0x1c4   :  { %1331 = vmatpush3.bf16.msra.mxu1 %v1462_v48 }
 0x1c5   :  { %1332 = vmatprep.subr.bf16.mxu1 %v1743_v0 }
 0x1c8   :  { %1333 = vmatpush3.bf16.msra.mxu1 %v1463_v49  ;;  %v1494_v49 = vld [vmem:[#allocation16 + $0x30] sm:$0xff]  }
 0x1c9   :  { %1358 = vmatprep.subr.bf16.mxu1 %v1743_v0 }
 0x27e   :  { %v397_v41 = vpop.f32.mrb[0].mxu1 }
 0x27f   :  { %v398_v42 = vadd.f32 %v1123_v40, %v397_v41  ;;  %v1296_v43 = vpop.f32.mrb[1].mxu1  ;;  %v1493_v40 = vld [vmem:[#allocation16 + $0x28] sm:$0xff]   ;;  %v1159_v41 = vld [vmem:[%s2096_s12] ss:$0 sm:$0xff] }
 0x280   :  { %v400_v44 = vpop.f32.mrb[2].mxu1 }
 0x281   :  { %v403_v45 = vmax.f32 %v398_v42, 0.0  ;;  %v1297_v46 = vpop.f32.mrb[3].mxu1 }
 0x283   :  { %v404_v47 = vpack.c.bf16 %v403_v45, %v403_v45 }
 0x285   :  { %1315 = vmatmul.mubr.bf16.vlgmr.msra.gmra.mrb[4].mxu0 %v404_v47 }
 0x286   :  { %1354 = vmatprep.mubr.msk.bf16.mxu0 %vm1744_vm0, %v1743_v0  ;;  %1339 = vmatpush3.bf16.msra.mxu0 %v1464_v50  ;;  %v1495_v50 = vld [vmem:[#allocation16 + $0x38] sm:$0xff]  }
 0x287   :  { %1340 = vmatprep.subr.bf16.mxu0 %v1743_v0 }
 0x28a   :  { %1341 = vmatpush3.bf16.msra.mxu0 %v1465_v51  ;;  %v1168_v51 = vld [vmem:[%s2098_s14] ss:$0 sm:$0xff]  ;;  %s1745_s14 = smov [#allocation17]  }
 0x28b   :  { %1342 = vmatprep.subr.bf16.mxu0 %v1743_v0  ;;  %s1101_s7 = sshll.u32 %s1745_s14, 4  ;;  %s1102_s7 = int_to_ptr.vmem [resolvable:$true] %s1101_s7 }
 0x28c   :  { %s1698_s9 = scalar_lea.vmem %s1102_s7, 128  ;;  %p1703_p3 = scmp.lt.s32.totalorder %s1102_s7, %s1102_s7 }
 0x28d   :  { %p1699_p2 = scmp.ne.s32.totalorder %s1102_s7, %s1698_s9  ;;  %p1704_p4 = scmp.lt.s32.totalorder %s1698_s9, %s1698_s9 }
 0x28e   :  { %1343 = vmatpush3.bf16.msra.mxu0 %v1466_v52 }
 0x28f   :  { %1344 = vmatprep.subr.bf16.mxu0 %v1743_v0  ;;  %p1705_p5 = por %p1704_p4, %p1703_p3 }
 0x291   :  { %p1706_p6 = pnand %p1705_p5, %p1699_p2 }
 0x292   :  { %1345 = vmatpush3.bf16.msra.mxu0 %v1467_v53 }
 0x293   :  { %1346 = vmatprep.subr.bf16.mxu0 %v1743_v0 }
 0x296   :  { %1347 = vmatpush3.bf16.msra.mxu0 %v1468_v54 }
 0x297   :  { %1348 = vmatprep.subr.bf16.mxu0 %v1743_v0 }
 0x29a   :  { %1349 = vmatpush3.bf16.msra.mxu0 %v1469_v55 }
 0x29b   :  { %1350 = vmatprep.subr.bf16.mxu0 %v1743_v0 }
 0x29e   :  { %1351 = vmatpush3.bf16.msra.mxu0 %v1470_v1 }
 0x29f   :  { %1352 = vmatprep.subr.bf16.mxu0 %v1743_v0 }
 0x2a2   :  { %1353 = vmatpush3.bf16.msra.mxu0 %v1471_v2 }
 0x2a3   :  { %1378 = vmatprep.subr.bf16.mxu0 %v1743_v0 }
 0x358   :  { %v510_v57 = vpop.f32.mrb[4].mxu0 }
 0x359   :  { %v511_v58 = vadd.f32 %v1132_v56, %v510_v57  ;;  %v1316_v59 = vpop.f32.mrb[5].mxu0 }
 0x35a   :  { %v513_v60 = vpop.f32.mrb[6].mxu0  ;;  %v1081_v59 = vlaneseq }
 0x35b   :  { %v516_v61 = vmax.f32 %v511_v58, 0.0  ;;  %v1317_v62 = vpop.f32.mrb[7].mxu0 }
 0x35c   :  { %v1082_v60 = vand.u32 127, %v1081_v59 }
 0x35d   :  { %v517_v63 = vpack.c.bf16 %v516_v61, %v516_v61 }
 0x35e   :  { %vm1083_vm1 = vcmp.lt.s32.totalorder %v1082_v60, 8 }
 0x35f   :  { %1335 = vmatmul.mubr.bf16.vlgmr.msra.gmra.mrb[4].mxu1 %v517_v63 }
 0x360   :  { %1374 = vmatprep.mubr.msk.bf16.mxu1 %vm1744_vm0, %v1743_v0  ;;  %1359 = vmatpush3.bf16.msra.mxu1 %v1472_v3 }
 0x361   :  { %1360 = vmatprep.subr.bf16.mxu1 %v1743_v0 }
 0x364   :  { %1361 = vmatpush3.bf16.msra.mxu1 %v1473_v4 }
 0x365   :  { %1362 = vmatprep.subr.bf16.mxu1 %v1743_v0 }
 0x368   :  { %1363 = vmatpush3.bf16.msra.mxu1 %v1474_v5 }
 0x369   :  { %1364 = vmatprep.subr.bf16.mxu1 %v1743_v0 }
 0x36c   :  { %1365 = vmatpush3.bf16.msra.mxu1 %v1475_v6 }
 0x36d   :  { %1366 = vmatprep.subr.bf16.mxu1 %v1743_v0 }
 0x370   :  { %1367 = vmatpush3.bf16.msra.mxu1 %v1476_v7 }
 0x371   :  { %1368 = vmatprep.subr.bf16.mxu1 %v1743_v0 }
 0x374   :  { %1369 = vmatpush3.bf16.msra.mxu1 %v1477_v8 }
 0x375   :  { %1370 = vmatprep.subr.bf16.mxu1 %v1743_v0 }
 0x378   :  { %1371 = vmatpush3.bf16.msra.mxu1 %v1478_v17 }
 0x379   :  { %1372 = vmatprep.subr.bf16.mxu1 %v1743_v0 }
 0x37c   :  { %1373 = vmatpush3.bf16.msra.mxu1 %v1479_v18 }
 0x37d   :  { %1398 = vmatprep.subr.bf16.mxu1 %v1743_v0 }
 0x432   :  { %v623_v10 = vpop.f32.mrb[4].mxu1 }
 0x433   :  { %v624_v11 = vadd.f32 %v1141_v9, %v623_v10  ;;  %v1336_v12 = vpop.f32.mrb[5].mxu1 }
 0x434   :  { %v626_v13 = vpop.f32.mrb[6].mxu1 }
 0x435   :  { %v629_v14 = vmax.f32 %v624_v11, 0.0  ;;  %v1337_v15 = vpop.f32.mrb[7].mxu1 }
 0x437   :  { %v630_v16 = vpack.c.bf16 %v629_v14, %v629_v14 }
 0x439   :  { %1355 = vmatmul.mubr.bf16.vlgmr.msra.gmra.mrb[8].mxu0 %v630_v16 }
 0x43a   :  { %1394 = vmatprep.mubr.msk.bf16.mxu0 %vm1744_vm0, %v1743_v0  ;;  %1379 = vmatpush3.bf16.msra.mxu0 %v1480_v19 }
 0x43b   :  { %1380 = vmatprep.subr.bf16.mxu0 %v1743_v0 }
 0x43e   :  { %1381 = vmatpush3.bf16.msra.mxu0 %v1481_v20 }
 0x43f   :  { %1382 = vmatprep.subr.bf16.mxu0 %v1743_v0 }
 0x442   :  { %1383 = vmatpush3.bf16.msra.mxu0 %v1482_v21 }
 0x443   :  { %1384 = vmatprep.subr.bf16.mxu0 %v1743_v0 }
 0x446   :  { %1385 = vmatpush3.bf16.msra.mxu0 %v1483_v22 }
 0x447   :  { %1386 = vmatprep.subr.bf16.mxu0 %v1743_v0 }
 0x44a   :  { %1387 = vmatpush3.bf16.msra.mxu0 %v1484_v23 }
 0x44b   :  { %1388 = vmatprep.subr.bf16.mxu0 %v1743_v0 }
 0x44e   :  { %1389 = vmatpush3.bf16.msra.mxu0 %v1485_v24 }
 0x44f   :  { %1390 = vmatprep.subr.bf16.mxu0 %v1743_v0 }
 0x452   :  { %1391 = vmatpush3.bf16.msra.mxu0 %v1486_v33 }
 0x453   :  { %1392 = vmatprep.subr.bf16.mxu0 %v1743_v0 }
 0x456   :  { %1393 = vmatpush3.bf16.msra.mxu0 %v1487_v34 }
 0x50c   :  { %v736_v26 = vpop.f32.mrb[8].mxu0 }
 0x50d   :  { %v737_v27 = vadd.f32 %v1150_v25, %v736_v26  ;;  %v1356_v28 = vpop.f32.mrb[9].mxu0 }
 0x50e   :  { %v739_v29 = vpop.f32.mrb[10].mxu0 }
 0x50f   :  { %v742_v30 = vmax.f32 %v737_v27, 0.0  ;;  %v1357_v31 = vpop.f32.mrb[11].mxu0 }
 0x511   :  { %v743_v32 = vpack.c.bf16 %v742_v30, %v742_v30 }
 0x513   :  { %1375 = vmatmul.mubr.bf16.vlgmr.msra.gmra.mrb[8].mxu1 %v743_v32 }
 0x514   :  { %1414 = vmatprep.mubr.msk.bf16.mxu1 %vm1744_vm0, %v1743_v0  ;;  %1399 = vmatpush3.bf16.msra.mxu1 %v1488_v35 }
 0x515   :  { %1400 = vmatprep.subr.bf16.mxu1 %v1743_v0 }
 0x518   :  { %1401 = vmatpush3.bf16.msra.mxu1 %v1489_v36 }
 0x519   :  { %1402 = vmatprep.subr.bf16.mxu1 %v1743_v0 }
 0x51c   :  { %1403 = vmatpush3.bf16.msra.mxu1 %v1490_v37 }
 0x51d   :  { %1404 = vmatprep.subr.bf16.mxu1 %v1743_v0 }
 0x520   :  { %1405 = vmatpush3.bf16.msra.mxu1 %v1491_v38 }
 0x521   :  { %1406 = vmatprep.subr.bf16.mxu1 %v1743_v0 }
 0x524   :  { %1407 = vmatpush3.bf16.msra.mxu1 %v1492_v39 }
 0x525   :  { %1408 = vmatprep.subr.bf16.mxu1 %v1743_v0 }
 0x528   :  { %1409 = vmatpush3.bf16.msra.mxu1 %v1493_v40 }
 0x529   :  { %1410 = vmatprep.subr.bf16.mxu1 %v1743_v0 }
 0x52c   :  { %1411 = vmatpush3.bf16.msra.mxu1 %v1494_v49 }
 0x52d   :  { %1412 = vmatprep.subr.bf16.mxu1 %v1743_v0  ;;  %v1177_v0 = vld [vmem:[%s2111_s13] ss:$0 sm:$0xff] }
 0x530   :  { %1413 = vmatpush3.bf16.msra.mxu1 %v1495_v50 }
 0x5e6   :  { %v849_v42 = vpop.f32.mrb[8].mxu1 }
 0x5e7   :  { %v850_v43 = vadd.f32 %v1159_v41, %v849_v42  ;;  %v1376_v44 = vpop.f32.mrb[9].mxu1 }
 0x5e8   :  { %v852_v45 = vpop.f32.mrb[10].mxu1 }
 0x5e9   :  { %v855_v46 = vmax.f32 %v850_v43, 0.0  ;;  %v1377_v47 = vpop.f32.mrb[11].mxu1 }
 0x5eb   :  { %v856_v48 = vpack.c.bf16 %v855_v46, %v855_v46 }
 0x5ed   :  { %1395 = vmatmul.mubr.bf16.vlgmr.msra.gmra.mrb[12].mxu0 %v856_v48 }
 0x6c0   :  { %v962_v52 = vpop.f32.mrb[12].mxu0 }
 0x6c1   :  { %v963_v53 = vadd.f32 %v1168_v51, %v962_v52  ;;  %v1396_v54 = vpop.f32.mrb[13].mxu0 }
 0x6c2   :  { %v965_v55 = vpop.f32.mrb[14].mxu0 }
 0x6c3   :  { %v968_v56 = vmax.f32 %v963_v53, 0.0  ;;  %v1397_v57 = vpop.f32.mrb[15].mxu0 }
 0x6c5   :  { %v969_v58 = vpack.c.bf16 %v968_v56, %v968_v56 }
 0x6c7   :  { %1415 = vmatmul.mubr.bf16.vlgmr.msra.gmra.mrb[12].mxu1 %v969_v58 }
 0x79a   :  { %v1075_v61 = vpop.f32.mrb[12].mxu1 }
 0x79b   :  { %v1076_v62 = vadd.f32 %v1177_v0, %v1075_v61  ;;  %v1416_v63 = vpop.f32.mrb[13].mxu1 }
 0x79c   :  { %v1078_v1 = vpop.f32.mrb[14].mxu1 }
 0x79d   :  { %v1417_v2 = vpop.f32.mrb[15].mxu1  ;;  %v1084_v3 = vsel %vm1083_vm1, %v1076_v62, -1e+30 }
 0x79e   :  { %1085 = vmax.xlane.f32.xlu0 %v1084_v3 }
 0x82b   :  { %v1086_v4 = vpop.xlane.xlu0 %1085 }
 0x82c   :  { %v1087_v5 = vsub.f32 %v1084_v3, %v1086_v4 }
 0x82e   :  { %v1088_v6 = vmul.f32 1.442695, %v1087_v5 }
 0x830   :  { %1496 = vpow2.f32 %v1088_v6 }
 0x83a   :  { %v1497_v7 = vpop.eup %1496 }
 0x83b   :  { %1090 = vadd.xlane.f32.xlu0 %v1497_v7 }
 0x8c8   :  { %v1091_v8 = vpop.xlane.xlu0 %1090 }
 0x8c9   :  { %1498 = vrcp.f32 %v1091_v8 }
 0x8d3   :  { %v1499_v9 = vpop.eup %1498 }
 0x8d4   :  { %v1093_v10 = vmul.f32 %v1499_v9, %v1497_v7 }
 0x8d6   :  { %1094 = vst [vmem:[#allocation17] sm:$0xff] %v1093_v10 }
 0x8d7   :  { %1709 = shalt.err (!%p1706_p6)
}
 0x8d8   :  { %s2112_s0 = sld [smem:[#allocation27_spill]] }
 0x8de   :  { %s1710_s29 = scalar_lea.hbm %s2112_s0, 128 }
 0x8df   :  { %p1711_p7 = scmp.ne.s32.totalorder %s2112_s0, %s1710_s29  ;;  %p1714_p8 = scmp.lt.u32.totalorder %s1710_s29, %s2112_s0 }
 0x8e1   :  { %p1716_p9 = pnand %p1714_p8, %p1711_p7 }
 0x8e3   :  { %1719 = shalt.err (!%p1716_p9)
}
 0x8e4   :  { %1104 = dma.vmem_to_hbm [thread:$0]  %s1102_s7, 128, %s2112_s0, [#allocation4]  }
 0x8e5   :  { %1730 = dma.done.wait [#allocation4], 128  }
 0x8e6   :  { %1731 = vsyncadd [#allocation4], 4294967168 }
 0x8e7   :  { %1108 = vsyncpa [#allocation3], 1 }
 0x8e8   :  { %1109 = vsyncpa [#allocation6], 1 }
 0x8e9   :  { %1110 = vsyncpa [#allocation9], 1 }
 0x8ea   :  { %1111 = vsyncpa [#allocation12], 1 }
 0x8eb   :  { %1112 = vsyncpa [#allocation15], 1 }
 0x8ec   :  { %1113 = vsyncpa [#allocation4], 1 }

</bundles_post_ra>
